<compile_context>
chip_gen: v5e
topology: v5e:2x2
jax: 0.10.0
libtpu: 0.0.40
codegen_flags: <defaults>
</compile_context>

<pallas_src>
import functools

import jax
import jax.numpy as jnp
from jax import lax
from jax.experimental import pallas as pl
from jax.experimental.pallas import tpu as pltpu


# ---------------------------------------------------------------------------
# Kernel
# ---------------------------------------------------------------------------
def _fire_kernel(x_ref, wsq_ref, bsq_ref, wexp_ref, bexp_ref, mask_ref,
                 out_ref, *, W):
    """One grid step: nb batch elements, all channels, all spatial positions.

    Layouts (rows = channels on sublanes, lanes = n_local*hw_pad + y*W + x):
      x_ref    (Cin,  Lb)   input block (channels-first, lane-padded spatial)
      wsq_ref  (Cs,   Cin)  squeeze 1x1 weights (BN folded)
      bsq_ref  (Cs,   1)    squeeze bias (f32)
      wexp_ref (2Ce,  9*Cs) fused expand weights; column block k = 3x3 tap k.
                            Rows [0,Ce) are zero except in the centre tap
                            block (k==4), where they hold expand_1x1 weights.
      bexp_ref (2Ce,  1)    [expand_1x1 bias ; expand_3x3 bias]  (f32)
      mask_ref (9,    Lb)   per-tap {0,1} border / lane-pad masks (f32)
      out_ref  (2Ce,  Lb)   rows [0,Ce)=expand_1x1, [Ce,2Ce)=expand_3x3
    """
    cs = wsq_ref.shape[0]
    lb = x_ref.shape[1]
    mxu_dt = wexp_ref.dtype

    # squeeze: 1x1 conv == channel matmul; bias + ReLU kept in f32.
    sq = jnp.dot(wsq_ref[...], x_ref[...], preferred_element_type=jnp.float32)
    sq = jnp.maximum(sq + bsq_ref[...], 0.0)                    # (Cs, Lb) f32

    # expand_1x1 + expand_3x3 fused: 9 accumulated K=Cs matmuls on
    # lane-rotated (XLU) and border-masked copies of the squeeze map.
    # No im2col scratch, no halo buffer, one lane-dense full-block store.
    acc = jnp.zeros(out_ref.shape, jnp.float32)
    for k in range(9):
        dy, dx = k // 3 - 1, k % 3 - 1
        shift = dy * W + dx                    # static flat-lane offset, tap k
        src = sq if shift == 0 else pltpu.roll(sq, (-shift) % lb, axis=1)
        src = src * mask_ref[k:k + 1, :]       # zero OOB / padded-lane reads
        acc = acc + jnp.dot(wexp_ref[:, k * cs:(k + 1) * cs],
                            src.astype(mxu_dt),
                            preferred_element_type=jnp.float32)

    out_ref[...] = jnp.maximum(acc + bexp_ref[...], 0.0).astype(out_ref.dtype)


# ---------------------------------------------------------------------------
# Wrapper-side helpers
# ---------------------------------------------------------------------------
def _fold_bn(w, b, gamma, beta, mean, var, eps=1e-5):
    """Fold eval-mode BatchNorm2d into conv weights/bias (Cout is last dim)."""
    scale = gamma / jnp.sqrt(var + eps)
    return w * scale, (b - mean) * scale + beta


def _vmem_limit_bytes():
    """Per-generation scoped-VMEM limit (v7x: 64 MiB phys, v5e/v6e: 128 MiB)."""
    try:
        cap = int(pltpu.get_tpu_info().vmem_capacity_bytes)
    except Exception:
        cap = 64 * 1024 * 1024            # conservative default (v7x per-core)
    return max(32 << 20, min(cap - (4 << 20), 112 << 20))


def _choose_nb(n, hw_pad, cin, cout2, cs, in_isz, out_isz, block_budget):
    """Batch elements per grid step, sized from a VMEM budget.

    Keeps >= 2 grid steps whenever N >= 2 so the 'parallel' lane axis can
    shard across both v7x TensorCores (larger N gets big lane blocks too).
    """
    per_lane = (2 * cin * in_isz          # input block (double-buffered)
                + 2 * cout2 * out_isz     # output block (double-buffered)
                + 2 * 9 * 4               # tap masks (f32, double-buffered)
                + (cout2 + 2 * cs) * 4)   # in-kernel f32 acc / squeeze temps
    nb_vmem = max(1, block_budget // (per_lane * hw_pad))
    nb_grid = max(1, n // 2) if n >= 2 else 1
    cap = int(min(nb_vmem, nb_grid))
    best = 1
    for d in range(1, n + 1):
        if n % d == 0 and d <= cap:
            best = d
    return best


def _tap_masks(H, W, hw_pad, nb):
    """(9, nb*hw_pad) {0,1} masks: tap-k neighbour in-bounds AND lane not pad."""
    hw = H * W
    pos = jnp.arange(hw_pad)
    xx, yy = pos % W, pos // W
    in_img = pos < hw
    rows = []
    for k in range(9):
        dy, dx = k // 3 - 1, k % 3 - 1
        rows.append(in_img & (xx + dx >= 0) & (xx + dx < W)
                    & (yy + dy >= 0) & (yy + dy < H))
    m = jnp.stack(rows).astype(jnp.float32)           # (9, hw_pad)
    return jnp.tile(m, (1, nb))                       # (9, nb*hw_pad)


def _prepare_fire_params(params, compute_dtype):
    """Fold BN, build channels-first weights and the fused expand matrix."""
    ws, bs = _fold_bn(params["w_sq"], params["b_sq"], *params["bn_sq"])
    we1, be1 = _fold_bn(params["w_e1"], params["b_e1"], *params["bn_e1"])
    w3, b3 = _fold_bn(params["w_e3"], params["b_e3"], *params["bn_e3"])
    Cs, Ce = int(ws.shape[1]), int(we1.shape[1])

    wsq_t = ws.T.astype(compute_dtype)                               # (Cs, Cin)

    # Fused expand weight (2Ce, 9*Cs): 3x3 taps in the bottom Ce rows; the
    # 1x1 expand rides on the centre-tap column block in the top Ce rows
    # (the extra zero-MAC columns are free — the MXU has huge slack here).
    w3_t = jnp.transpose(w3.reshape(9, Cs, Ce), (2, 0, 1)).reshape(Ce, 9 * Cs)
    top = jnp.zeros((Ce, 9 * Cs), w3_t.dtype).at[:, 4 * Cs:5 * Cs].set(we1.T)
    wexp = jnp.concatenate([top, w3_t], axis=0).astype(compute_dtype)

    bsq = bs.reshape(Cs, 1).astype(jnp.float32)
    bexp = jnp.concatenate([be1, b3]).reshape(2 * Ce, 1).astype(jnp.float32)
    return wsq_t, bsq, wexp, bexp, Cs, Ce


# ---------------------------------------------------------------------------
# Public entry point (NCHW in / NCHW out, matching the PyTorch Fire.forward)
# ---------------------------------------------------------------------------
def fire_forward(x_nchw, params, *, compute_dtype=jnp.bfloat16, out_dtype=None):
    """Fire.forward. Input/output are NCHW (PyTorch convention)."""
    if out_dtype is None:
        out_dtype = compute_dtype
    N, Cin, H, W = map(int, x_nchw.shape)
    hw = H * W
    hw_pad = -(-hw // 128) * 128                       # lane-pad to 128

    wsq_t, bsq, wexp, bexp, Cs, Ce = _prepare_fire_params(params, compute_dtype)

    vmem_limit = _vmem_limit_bytes()
    nb = _choose_nb(N, hw_pad, Cin, 2 * Ce, Cs,
                    jnp.dtype(compute_dtype).itemsize,
                    jnp.dtype(out_dtype).itemsize,
                    int(0.45 * vmem_limit))
    lb = nb * hw_pad                                   # lanes per grid step
    grid = (N // nb,)

    # Channels-first, spatially flattened, lane-padded input.  Cast BEFORE the
    # transpose so the layout pass moves half the bytes in the bf16 path.
    x_flat = x_nchw.astype(compute_dtype).reshape(N, Cin, hw)
    x_flat = jnp.pad(x_flat, ((0, 0), (0, 0), (0, hw_pad - hw)))
    x_cf = x_flat.transpose(1, 0, 2).reshape(Cin, N * hw_pad)

    masks = _tap_masks(H, W, hw_pad, nb)               # (9, lb), constant block

    kernel = functools.partial(_fire_kernel, W=W)

    out_cf = pl.pallas_call(
        kernel,
        out_shape=jax.ShapeDtypeStruct((2 * Ce, N * hw_pad), out_dtype),
        grid_spec=pltpu.PrefetchScalarGridSpec(
            num_scalar_prefetch=0,
            grid=grid,
            in_specs=[
                pl.BlockSpec((Cin, lb), lambda i: (0, i)),
                pl.BlockSpec((Cs, Cin), lambda i: (0, 0)),
                pl.BlockSpec((Cs, 1), lambda i: (0, 0)),
                pl.BlockSpec((2 * Ce, 9 * Cs), lambda i: (0, 0)),
                pl.BlockSpec((2 * Ce, 1), lambda i: (0, 0)),
                pl.BlockSpec((9, lb), lambda i: (0, 0)),
            ],
            out_specs=pl.BlockSpec((2 * Ce, lb), lambda i: (0, i)),
        ),
        compiler_params=pltpu.CompilerParams(
            dimension_semantics=("parallel",),
            vmem_limit_bytes=vmem_limit,
        ),
    )(x_cf, wsq_t, bsq, wexp, bexp, masks)

    # (2*Ce, N*hw_pad) -> NCHW; channel order [expand_1x1, expand_3x3].
    out = out_cf.reshape(2 * Ce, N, hw_pad)[:, :, :hw]
    return out.transpose(1, 0, 2).reshape(N, 2 * Ce, H, W)


# ---------------------------------------------------------------------------
# Pure-JAX reference + test harness
# ---------------------------------------------------------------------------
def _reference_fire(x_nchw, params):
    """Pure-JAX reference (NCHW convs) for correctness checking."""
    def conv(x, w_hwio, b, pad):
        w = jnp.transpose(w_hwio, (3, 2, 0, 1))  # -> OIHW
        y = lax.conv_general_dilated(
            x, w, window_strides=(1, 1), padding=[(pad, pad), (pad, pad)],
            dimension_numbers=("NCHW", "OIHW", "NCHW"))
        return y + b[None, :, None, None]

    def bn_relu(y, bnp):
        gamma, beta, mean, var = bnp
        s = gamma / jnp.sqrt(var + 1e-5)
        y = (y - mean[None, :, None, None]) * s[None, :, None, None] \
            + beta[None, :, None, None]
        return jnp.maximum(y, 0.0)

    w_sq = params["w_sq"][None, None]            # (1,1,Cin,Cs)
    w_e1 = params["w_e1"][None, None]            # (1,1,Cs,Ce)
    sq = bn_relu(conv(x_nchw, w_sq, params["b_sq"], 0), params["bn_sq"])
    e1 = bn_relu(conv(sq, w_e1, params["b_e1"], 0), params["bn_e1"])
    e3 = bn_relu(conv(sq, params["w_e3"], params["b_e3"], 1), params["bn_e3"])
    return jnp.concatenate([e1, e3], axis=1)


def make_params(key, in_channel, out_channel, squeeze_channel):
    ce = out_channel // 2
    ks = jax.random.split(key, 12)

    def bn(k, c):
        k1, k2, k3 = jax.random.split(k, 3)
        gamma = 1.0 + 0.1 * jax.random.normal(k1, (c,), jnp.float32)
        beta = 0.1 * jax.random.normal(k2, (c,), jnp.float32)
        mean = 0.1 * jax.random.normal(k3, (c,), jnp.float32)
        var = jnp.ones((c,), jnp.float32) * 0.9
        return (gamma, beta, mean, var)

    return {
        "w_sq": 0.2 * jax.random.normal(ks[0], (in_channel, squeeze_channel), jnp.float32),
        "b_sq": 0.05 * jax.random.normal(ks[1], (squeeze_channel,), jnp.float32),
        "bn_sq": bn(ks[2], squeeze_channel),
        "w_e1": 0.2 * jax.random.normal(ks[3], (squeeze_channel, ce), jnp.float32),
        "b_e1": 0.05 * jax.random.normal(ks[4], (ce,), jnp.float32),
        "bn_e1": bn(ks[5], ce),
        "w_e3": 0.2 * jax.random.normal(ks[6], (3, 3, squeeze_channel, ce), jnp.float32),
        "b_e3": 0.05 * jax.random.normal(ks[7], (ce,), jnp.float32),
        "bn_e3": bn(ks[8], ce),
    }


if __name__ == "__main__":
    key = jax.random.PRNGKey(0)

    configs = [
        # (N, Cin, H, W, out_channel, squeeze_channel)
        (2, 8, 16, 16, 16, 8),     # H*W % 128 == 0 (no lane padding needed)
        (2, 16, 10, 10, 32, 8),    # ragged spatial -> lane-padding path
    ]

    for idx, (N, Cin, H, W, out_c, sq_c) in enumerate(configs):
        k_x, k_p, key = jax.random.split(key, 3)
        x = jax.random.normal(k_x, (N, Cin, H, W), jnp.float32)
        params = make_params(k_p, Cin, out_c, sq_c)
        y_ref = _reference_fire(x, params)

        # f32 operands / f32 output: strict-correctness path.
        y = jax.block_until_ready(
            fire_forward(x, params, compute_dtype=jnp.float32))
        assert y.shape == (N, out_c, H, W), (idx, y.shape)
        err = float(jnp.max(jnp.abs(y - y_ref)))
        assert jnp.allclose(y, y_ref, atol=5e-4, rtol=1e-3), (idx, err)

        # bf16 operands + bf16 output (bandwidth path; f32 accumulation).
        y_bf = jax.block_until_ready(
            fire_forward(x, params, compute_dtype=jnp.bfloat16))
        y_bf32 = y_bf.astype(jnp.float32)
        err_bf = float(jnp.max(jnp.abs(y_bf32 - y_ref)))
        assert jnp.allclose(y_bf32, y_ref, atol=1e-1, rtol=1e-1), (idx, err_bf)

    print("KERNEL_OK")
</pallas_src>

<mosaic_0001>
module attributes {stable_mosaic.version = 11 : i64} {
  func.func @_fire_kernel(%arg0: i32, %arg1: memref<8x256xf32, #tpu.memory_space<vmem>>, %arg2: memref<8x8xf32, #tpu.memory_space<vmem>>, %arg3: memref<8x1xf32, #tpu.memory_space<vmem>>, %arg4: memref<16x72xf32, #tpu.memory_space<vmem>>, %arg5: memref<16x1xf32, #tpu.memory_space<vmem>>, %arg6: memref<9x256xf32, #tpu.memory_space<vmem>>, %arg7: memref<16x256xf32, #tpu.memory_space<vmem>>) attributes {dimension_semantics = [#tpu.dimension_semantics<parallel>], iteration_bounds = array<i64: 2>, scalar_prefetch = 0 : i64, scratch_operands = 0 : i64, tpu.core_type = #tpu.core_type<tc>, window_params = [{transform_indices = @transform_0, window_bounds = array<i64: 8, 256>}, {pipeline_mode = #tpu.pipeline_mode<synchronous>, transform_indices = @transform_1, window_bounds = array<i64: 8, 8>}, {pipeline_mode = #tpu.pipeline_mode<synchronous>, transform_indices = @transform_2, window_bounds = array<i64: 8, 1>}, {pipeline_mode = #tpu.pipeline_mode<synchronous>, transform_indices = @transform_3, window_bounds = array<i64: 16, 72>}, {pipeline_mode = #tpu.pipeline_mode<synchronous>, transform_indices = @transform_4, window_bounds = array<i64: 16, 1>}, {pipeline_mode = #tpu.pipeline_mode<synchronous>, transform_indices = @transform_5, window_bounds = array<i64: 9, 256>}, {transform_indices = @transform_6, window_bounds = array<i64: 16, 256>}]} {
    %c0 = arith.constant 0 : index
    %c0_0 = arith.constant 0 : index
    %0 = vector.load %arg2[%c0, %c0_0] : memref<8x8xf32, #tpu.memory_space<vmem>>, vector<8x8xf32>
    %c0_1 = arith.constant 0 : index
    %c0_2 = arith.constant 0 : index
    %1 = vector.load %arg1[%c0_1, %c0_2] : memref<8x256xf32, #tpu.memory_space<vmem>>, vector<8x256xf32>
    %cst = arith.constant dense<0.000000e+00> : vector<8x256xf32>
    %2 = tpu.matmul %0, %1, %cst {dimension_numbers = #tpu.dot_dimension_numbers<[1], [0], [0], [1], [0, 0, 1, 1], [], []>} : vector<8x8xf32>, vector<8x256xf32>, vector<8x256xf32> -> vector<8x256xf32>
    %c0_3 = arith.constant 0 : index
    %c0_4 = arith.constant 0 : index
    %3 = vector.load %arg3[%c0_3, %c0_4] : memref<8x1xf32, #tpu.memory_space<vmem>>, vector<8x1xf32>
    %4 = vector.broadcast %3 : vector<8x1xf32> to vector<8x256xf32>
    %5 = arith.addf %2, %4 : vector<8x256xf32>
    %cst_5 = arith.constant 0.000000e+00 : f32
    %6 = vector.broadcast %cst_5 : f32 to vector<8x256xf32>
    %7 = arith.maximumf %5, %6 : vector<8x256xf32>
    %cst_6 = arith.constant 0.000000e+00 : f32
    %8 = vector.broadcast %cst_6 : f32 to vector<16x256xf32>
    %c17_i32 = arith.constant 17 : i32
    %9 = tpu.dynamic_rotate %7 by %c17_i32 dim 1 : vector<8x256xf32>, i32 -> vector<8x256xf32>
    %c0_7 = arith.constant 0 : index
    %c0_8 = arith.constant 0 : index
    %10 = vector.load %arg6[%c0_7, %c0_8] : memref<9x256xf32, #tpu.memory_space<vmem>>, vector<1x256xf32>
    %11 = vector.broadcast %10 : vector<1x256xf32> to vector<8x256xf32>
    %12 = arith.mulf %9, %11 : vector<8x256xf32>
    %c0_9 = arith.constant 0 : index
    %c0_10 = arith.constant 0 : index
    %13 = vector.load %arg4[%c0_9, %c0_10] : memref<16x72xf32, #tpu.memory_space<vmem>>, vector<16x8xf32>
    %cst_11 = arith.constant dense<0.000000e+00> : vector<16x256xf32>
    %14 = tpu.matmul %13, %12, %cst_11 {dimension_numbers = #tpu.dot_dimension_numbers<[1], [0], [0], [1], [0, 0, 1, 1], [], []>} : vector<16x8xf32>, vector<8x256xf32>, vector<16x256xf32> -> vector<16x256xf32>
    %15 = arith.addf %8, %14 : vector<16x256xf32>
    %c16_i32 = arith.constant 16 : i32
    %16 = tpu.dynamic_rotate %7 by %c16_i32 dim 1 : vector<8x256xf32>, i32 -> vector<8x256xf32>
    %c1 = arith.constant 1 : index
    %c0_12 = arith.constant 0 : index
    %17 = vector.load %arg6[%c1, %c0_12] : memref<9x256xf32, #tpu.memory_space<vmem>>, vector<1x256xf32>
    %18 = vector.broadcast %17 : vector<1x256xf32> to vector<8x256xf32>
    %19 = arith.mulf %16, %18 : vector<8x256xf32>
    %c0_13 = arith.constant 0 : index
    %c8 = arith.constant 8 : index
    %20 = vector.load %arg4[%c0_13, %c8] : memref<16x72xf32, #tpu.memory_space<vmem>>, vector<16x8xf32>
    %cst_14 = arith.constant dense<0.000000e+00> : vector<16x256xf32>
    %21 = tpu.matmul %20, %19, %cst_14 {dimension_numbers = #tpu.dot_dimension_numbers<[1], [0], [0], [1], [0, 0, 1, 1], [], []>} : vector<16x8xf32>, vector<8x256xf32>, vector<16x256xf32> -> vector<16x256xf32>
    %22 = arith.addf %15, %21 : vector<16x256xf32>
    %c15_i32 = arith.constant 15 : i32
    %23 = tpu.dynamic_rotate %7 by %c15_i32 dim 1 : vector<8x256xf32>, i32 -> vector<8x256xf32>
    %c2 = arith.constant 2 : index
    %c0_15 = arith.constant 0 : index
    %24 = vector.load %arg6[%c2, %c0_15] : memref<9x256xf32, #tpu.memory_space<vmem>>, vector<1x256xf32>
    %25 = vector.broadcast %24 : vector<1x256xf32> to vector<8x256xf32>
    %26 = arith.mulf %23, %25 : vector<8x256xf32>
    %c0_16 = arith.constant 0 : index
    %c16 = arith.constant 16 : index
    %27 = vector.load %arg4[%c0_16, %c16] : memref<16x72xf32, #tpu.memory_space<vmem>>, vector<16x8xf32>
    %cst_17 = arith.constant dense<0.000000e+00> : vector<16x256xf32>
    %28 = tpu.matmul %27, %26, %cst_17 {dimension_numbers = #tpu.dot_dimension_numbers<[1], [0], [0], [1], [0, 0, 1, 1], [], []>} : vector<16x8xf32>, vector<8x256xf32>, vector<16x256xf32> -> vector<16x256xf32>
    %29 = arith.addf %22, %28 : vector<16x256xf32>
    %c1_i32 = arith.constant 1 : i32
    %30 = tpu.dynamic_rotate %7 by %c1_i32 dim 1 : vector<8x256xf32>, i32 -> vector<8x256xf32>
    %c3 = arith.constant 3 : index
    %c0_18 = arith.constant 0 : index
    %31 = vector.load %arg6[%c3, %c0_18] : memref<9x256xf32, #tpu.memory_space<vmem>>, vector<1x256xf32>
    %32 = vector.broadcast %31 : vector<1x256xf32> to vector<8x256xf32>
    %33 = arith.mulf %30, %32 : vector<8x256xf32>
    %c0_19 = arith.constant 0 : index
    %c24 = arith.constant 24 : index
    %34 = vector.load %arg4[%c0_19, %c24] : memref<16x72xf32, #tpu.memory_space<vmem>>, vector<16x8xf32>
    %cst_20 = arith.constant dense<0.000000e+00> : vector<16x256xf32>
    %35 = tpu.matmul %34, %33, %cst_20 {dimension_numbers = #tpu.dot_dimension_numbers<[1], [0], [0], [1], [0, 0, 1, 1], [], []>} : vector<16x8xf32>, vector<8x256xf32>, vector<16x256xf32> -> vector<16x256xf32>
    %36 = arith.addf %29, %35 : vector<16x256xf32>
    %c4 = arith.constant 4 : index
    %c0_21 = arith.constant 0 : index
    %37 = vector.load %arg6[%c4, %c0_21] : memref<9x256xf32, #tpu.memory_space<vmem>>, vector<1x256xf32>
    %38 = vector.broadcast %37 : vector<1x256xf32> to vector<8x256xf32>
    %39 = arith.mulf %7, %38 : vector<8x256xf32>
    %c0_22 = arith.constant 0 : index
    %c32 = arith.constant 32 : index
    %40 = vector.load %arg4[%c0_22, %c32] : memref<16x72xf32, #tpu.memory_space<vmem>>, vector<16x8xf32>
    %cst_23 = arith.constant dense<0.000000e+00> : vector<16x256xf32>
    %41 = tpu.matmul %40, %39, %cst_23 {dimension_numbers = #tpu.dot_dimension_numbers<[1], [0], [0], [1], [0, 0, 1, 1], [], []>} : vector<16x8xf32>, vector<8x256xf32>, vector<16x256xf32> -> vector<16x256xf32>
    %42 = arith.addf %36, %41 : vector<16x256xf32>
    %c255_i32 = arith.constant 255 : i32
    %43 = tpu.dynamic_rotate %7 by %c255_i32 dim 1 : vector<8x256xf32>, i32 -> vector<8x256xf32>
    %c5 = arith.constant 5 : index
    %c0_24 = arith.constant 0 : index
    %44 = vector.load %arg6[%c5, %c0_24] : memref<9x256xf32, #tpu.memory_space<vmem>>, vector<1x256xf32>
    %45 = vector.broadcast %44 : vector<1x256xf32> to vector<8x256xf32>
    %46 = arith.mulf %43, %45 : vector<8x256xf32>
    %c0_25 = arith.constant 0 : index
    %c40 = arith.constant 40 : index
    %47 = vector.load %arg4[%c0_25, %c40] : memref<16x72xf32, #tpu.memory_space<vmem>>, vector<16x8xf32>
    %cst_26 = arith.constant dense<0.000000e+00> : vector<16x256xf32>
    %48 = tpu.matmul %47, %46, %cst_26 {dimension_numbers = #tpu.dot_dimension_numbers<[1], [0], [0], [1], [0, 0, 1, 1], [], []>} : vector<16x8xf32>, vector<8x256xf32>, vector<16x256xf32> -> vector<16x256xf32>
    %49 = arith.addf %42, %48 : vector<16x256xf32>
    %c241_i32 = arith.constant 241 : i32
    %50 = tpu.dynamic_rotate %7 by %c241_i32 dim 1 : vector<8x256xf32>, i32 -> vector<8x256xf32>
    %c6 = arith.constant 6 : index
    %c0_27 = arith.constant 0 : index
    %51 = vector.load %arg6[%c6, %c0_27] : memref<9x256xf32, #tpu.memory_space<vmem>>, vector<1x256xf32>
    %52 = vector.broadcast %51 : vector<1x256xf32> to vector<8x256xf32>
    %53 = arith.mulf %50, %52 : vector<8x256xf32>
    %c0_28 = arith.constant 0 : index
    %c48 = arith.constant 48 : index
    %54 = vector.load %arg4[%c0_28, %c48] : memref<16x72xf32, #tpu.memory_space<vmem>>, vector<16x8xf32>
    %cst_29 = arith.constant dense<0.000000e+00> : vector<16x256xf32>
    %55 = tpu.matmul %54, %53, %cst_29 {dimension_numbers = #tpu.dot_dimension_numbers<[1], [0], [0], [1], [0, 0, 1, 1], [], []>} : vector<16x8xf32>, vector<8x256xf32>, vector<16x256xf32> -> vector<16x256xf32>
    %56 = arith.addf %49, %55 : vector<16x256xf32>
    %c240_i32 = arith.constant 240 : i32
    %57 = tpu.dynamic_rotate %7 by %c240_i32 dim 1 : vector<8x256xf32>, i32 -> vector<8x256xf32>
    %c7 = arith.constant 7 : index
    %c0_30 = arith.constant 0 : index
    %58 = vector.load %arg6[%c7, %c0_30] : memref<9x256xf32, #tpu.memory_space<vmem>>, vector<1x256xf32>
    %59 = vector.broadcast %58 : vector<1x256xf32> to vector<8x256xf32>
    %60 = arith.mulf %57, %59 : vector<8x256xf32>
    %c0_31 = arith.constant 0 : index
    %c56 = arith.constant 56 : index
    %61 = vector.load %arg4[%c0_31, %c56] : memref<16x72xf32, #tpu.memory_space<vmem>>, vector<16x8xf32>
    %cst_32 = arith.constant dense<0.000000e+00> : vector<16x256xf32>
    %62 = tpu.matmul %61, %60, %cst_32 {dimension_numbers = #tpu.dot_dimension_numbers<[1], [0], [0], [1], [0, 0, 1, 1], [], []>} : vector<16x8xf32>, vector<8x256xf32>, vector<16x256xf32> -> vector<16x256xf32>
    %63 = arith.addf %56, %62 : vector<16x256xf32>
    %c239_i32 = arith.constant 239 : i32
    %64 = tpu.dynamic_rotate %7 by %c239_i32 dim 1 : vector<8x256xf32>, i32 -> vector<8x256xf32>
    %c8_33 = arith.constant 8 : index
    %c0_34 = arith.constant 0 : index
    %65 = vector.load %arg6[%c8_33, %c0_34] : memref<9x256xf32, #tpu.memory_space<vmem>>, vector<1x256xf32>
    %66 = vector.broadcast %65 : vector<1x256xf32> to vector<8x256xf32>
    %67 = arith.mulf %64, %66 : vector<8x256xf32>
    %c0_35 = arith.constant 0 : index
    %c64 = arith.constant 64 : index
    %68 = vector.load %arg4[%c0_35, %c64] : memref<16x72xf32, #tpu.memory_space<vmem>>, vector<16x8xf32>
    %cst_36 = arith.constant dense<0.000000e+00> : vector<16x256xf32>
    %69 = tpu.matmul %68, %67, %cst_36 {dimension_numbers = #tpu.dot_dimension_numbers<[1], [0], [0], [1], [0, 0, 1, 1], [], []>} : vector<16x8xf32>, vector<8x256xf32>, vector<16x256xf32> -> vector<16x256xf32>
    %70 = arith.addf %63, %69 : vector<16x256xf32>
    %c0_37 = arith.constant 0 : index
    %c0_38 = arith.constant 0 : index
    %71 = vector.load %arg5[%c0_37, %c0_38] : memref<16x1xf32, #tpu.memory_space<vmem>>, vector<16x1xf32>
    %72 = vector.broadcast %71 : vector<16x1xf32> to vector<16x256xf32>
    %73 = arith.addf %70, %72 : vector<16x256xf32>
    %cst_39 = arith.constant 0.000000e+00 : f32
    %74 = vector.broadcast %cst_39 : f32 to vector<16x256xf32>
    %75 = arith.maximumf %73, %74 : vector<16x256xf32>
    %c0_40 = arith.constant 0 : index
    %c0_41 = arith.constant 0 : index
    %76 = vector.load %arg7[%c0_40, %c0_41] : memref<16x256xf32, #tpu.memory_space<vmem>>, vector<16x256xf32>
    tpu.vector_store %arg7[%c0_40, %c0_41], %75 {strides = array<i32>} : memref<16x256xf32, #tpu.memory_space<vmem>>, vector<16x256xf32>,
    return
  }
  func.func @transform_0(%arg0: i32) -> (i32, i32) {
    %c0_i32 = arith.constant 0 : i32
    %c0_i32_0 = arith.constant 0 : i32
    return %c0_i32, %arg0 : i32, i32
  }
  func.func @transform_1(%arg0: i32) -> (i32, i32) {
    %c0_i32 = arith.constant 0 : i32
    %c0_i32_0 = arith.constant 0 : i32
    %c0_i32_1 = arith.constant 0 : i32
    return %c0_i32, %c0_i32_0 : i32, i32
  }
  func.func @transform_2(%arg0: i32) -> (i32, i32) {
    %c0_i32 = arith.constant 0 : i32
    %c0_i32_0 = arith.constant 0 : i32
    %c0_i32_1 = arith.constant 0 : i32
    return %c0_i32, %c0_i32_0 : i32, i32
  }
  func.func @transform_3(%arg0: i32) -> (i32, i32) {
    %c0_i32 = arith.constant 0 : i32
    %c0_i32_0 = arith.constant 0 : i32
    %c0_i32_1 = arith.constant 0 : i32
    return %c0_i32, %c0_i32_0 : i32, i32
  }
  func.func @transform_4(%arg0: i32) -> (i32, i32) {
    %c0_i32 = arith.constant 0 : i32
    %c0_i32_0 = arith.constant 0 : i32
    %c0_i32_1 = arith.constant 0 : i32
    return %c0_i32, %c0_i32_0 : i32, i32
  }
  func.func @transform_5(%arg0: i32) -> (i32, i32) {
    %c0_i32 = arith.constant 0 : i32
    %c0_i32_0 = arith.constant 0 : i32
    %c0_i32_1 = arith.constant 0 : i32
    return %c0_i32, %c0_i32_0 : i32, i32
  }
  func.func @transform_6(%arg0: i32) -> (i32, i32) {
    %c0_i32 = arith.constant 0 : i32
    %c0_i32_0 = arith.constant 0 : i32
    return %c0_i32, %arg0 : i32, i32
  }
}

</mosaic_0001>

<bundles_post_ra>
// kernel: tpu_custom_call.1
= control target key start
LH: loop header
LB: loop body
LE: loop exit
PB: predicated region body
PF: predicated region fallthrough
CT: control target
= control target key end

     0   :  { %11 = vsyncpa [#allocation3], 0  ;;  %s1706_s0 = inlined_call_operand.hbm [shape: f32[8,512], index: 0, kind: input, shape index: {}]   ;;  %s1707_s1 = inlined_call_operand.vmem [shape: f32[8,8], index: 1, kind: input, shape index: {}]   ;;  %s1708_s2 = inlined_call_operand.vmem [shape: f32[8,1], index: 2, kind: input, shape index: {}]   ;;  %s1709_s3 = inlined_call_operand.vmem [shape: f32[16,72], index: 3, kind: input, shape index: {}]   ;;  %s1710_s4 = inlined_call_operand.vmem [shape: f32[16,1], index: 4, kind: input, shape index: {}]   ;;  %s1711_s5 = inlined_call_operand.hbm [shape: f32[9,256], index: 5, kind: input, shape index: {}]   ;;  %s1712_s6 = inlined_call_operand.hbm [shape: f32[16,512], index: 6, kind: output, shape index: {}]  }
   0x1   :  { %13 = vsyncpa [#allocation3 + $0x1], 0 }
   0x2   :  { %14 = vsyncpa [#allocation6], 0 }
   0x3   :  { %15 = vsyncpa [#allocation4], 0 }
   0x4   :  { %17 = vsyncpa [#allocation4 + $0x1], 0  ;;  %s1442_s21 = smov 0   ;;  %s1444_s22 = smov 0  }
   0x5   :  { %s1446_s23 = smov 0   ;;  %s1448_s24 = smov 0  }
   0x6 LB: > { %s208_s27 = sshll.u32 %s1711_s5, 4  ;;  %s1466_s28 = sadd.s32 4294967295, %s1384_s24   ;;  %s1384_s24 = sphi %s1448_s24, %s1722_s24   ;;  %s1380_s23 = sphi %s1446_s23, %s1721_s23   ;;  %s1376_s22 = sphi %s1444_s22, %s1720_s22   ;;  %s1372_s21 = sphi %s1442_s21, %s1719_s21   ;;  %s209_s27 = int_to_ptr.hbm [resolvable:$true] %s208_s27 }
   0x7   : > { %p1120_p0 = scmp.ge.s32.totalorder %s1384_s24, 1  ;;  %p44_p1 = scmp.eq.s32.totalorder %s1466_s28, 0 }
   0x8   : > { %p185_p2 = scmp.lt.s32.totalorder %s1384_s24, 3  ;;  %s1386_s30 = smov [#allocation5]  }
   0x9   : > { %s210_s7 = sshll.u32 %s1386_s30, 4  ;;  %s1387_s8 = smov 256   ;;  %s211_s7 = int_to_ptr.vmem [resolvable:$true] %s210_s7 }
   0xa   : > { %p1471_p3 = pnand %p1120_p0, %p185_p2  ;;  %s1388_s9 = smov 16  }
   0xb   : > { %s1119_s10 = sadd.s32 4294967294, %s1384_s24   ;;  %s1482_s11 = sadd.s32 1, %s1384_s24  }
   0xc   : > { %p1183_p4 = pneg %p1471_p3  ;;  %s30_s12 = sadd.s32 1, %s1380_s23 }
   0xd   : > { %s27_s13 = ssub.s32 %s1384_s24, %s1482_s11  ;;  %p37_p7 = scmp.ne.s32.totalorder %s1380_s23, %s1376_s22 }
   0xe   : > { %p1184_p6 = pnand %p1183_p4, %p44_p1  ;;  %p28_p8 = scmp.eq.s32.totalorder %s27_s13, 0 }
   0xf   : > { %p38_p9 = scmp.eq.s32.totalorder %s1384_s24, 0  ;;  %p43_p10 = scmp.ne.s32.totalorder %s1376_s22, %s1372_s21 }
  0x10   : > { %1186 = dma.hbm_to_vmem [thread:$0]  (!%p1184_p6), %s209_s27, 512, %s211_s7, [#allocation6], %s1387_s8, %s1387_s8, %s1388_s9  }
  0x11   : > { %p172_p11 = scmp.eq.s32.totalorder %s1466_s28, 1  ;;  %p1498_p12 = por %p44_p1, %p43_p10 }
  0x12   : > { %s1494_s14 = scalar_select %p28_p8, %s1380_s23, %s30_s12  }
  0x13   : > { %p1502_p13 = por %p172_p11, %p37_p7  ;;  %p178_p0 = scmp.eq.s32.totalorder %s1119_s10, 1 }
  0x14   : > { %p39_p2 = por %p38_p9, %p37_p7  ;;  %s224_s17 = sand.u32 1, %s1380_s23  }
  0x15   : > { %p1507_p4 = por %p178_p0, %p43_p10  ;;  %p1196_p6 = scmp.lt.s32.totalorder %s1384_s24, 2 }
  0x16   : > { %s1123_s19 = sshll.u32 %s224_s17, 4  ;;  %s1173_s20 = sshll.u32 %s1384_s24, 4 }
  0x17   : > { %s233_s27 = scalar_lea.hbm %s1706_s0, %s1173_s20  ;;  %s228_s7 = scalar_lea.vmem [#allocation2], %s1123_s19 }
  0x18   : > { %s235_s30 = sshll.u32 %s233_s27, 4  ;;  %s237_s8 = sshll.u32 %s228_s7, 4  ;;  %s236_s30 = int_to_ptr.hbm [resolvable:$true] %s235_s30  ;;  %s238_s8 = int_to_ptr.vmem [resolvable:$true] %s237_s8 }
  0x19   : > { %p1516_p8 = pnand %p1196_p6, %p39_p2  ;;  %s225_s10 = scalar_lea.sflag [#allocation3], %s224_s17 }
  0x1a   : > { %s1284_s12 = sshra.s32 %s236_s30, 4  ;;  %s1291_s19 = scalar_lea.hbm %s1706_s0, 32  ;;  %s1285_s12 = int_to_ptr.hbm [resolvable:$true] %s1284_s12 }
  0x1b   : > { %s1286_s13 = scalar_lea.hbm %s1285_s12, 16  ;;  %p1288_p9 = pneg %p1516_p8 }
  0x1c   : > { %p1287_p7 = scmp.ne.s32.totalorder %s1285_s12, %s1286_s13  ;;  %p1292_p0 = scmp.lt.s32.totalorder %s1285_s12, %s1706_s0 }
  0x1d   : > { %p1293_p2 = scmp.lt.s32.totalorder %s1291_s19, %s1286_s13 }
  0x1e   : > { %p1289_p10 = pnand %p1288_p9, %p1287_p7 }
  0x1f   : > { %p1294_p6 = por %p1293_p2, %p1292_p0 }
  0x20   : > { %p1290_p11 = pneg %p1289_p10 }
  0x22   : > { %p1295_p5 = pnand %p1294_p6, %p1290_p11 }
  0x24   : > { %1298 = shalt.err (!%p1295_p5)
}
  0x25   : > { %1190 = dma.hbm_to_vmem [thread:$0]  (!%p1516_p8), %s236_s30, 256, %s238_s8, %s225_s10  }
  0x26   : > { %246 = sbr.rel (%p1471_p3) target bundleno = 518 (0x206), region = 44  ;;  %s1533_s17 = sand.u32 (!%p1471_p3), 1, %s1376_s22  }
  0x27   : > { %s1127_s7 = sshll.u32 (!%p1471_p3), %s1533_s17, 4  ;;  %s249_s20 = scalar_lea.sflag (!%p1471_p3), [#allocation3], %s1533_s17 }
  0x28   : > { %s252_s25 = scalar_lea.vmem (!%p1471_p3), [#allocation2], %s1127_s7 }
  0x2b   : > { %1359 = dma.done.wait (%p1498_p12), %s249_s20, 256  }
  0x2c   : > { %1361 = vsyncadd (%p1498_p12), %s249_s20, 4294967040 }
  0x2d   : > { %1363 = dma.done.wait (%p44_p1), [#allocation6], 512  }
  0x2e   : > { %1365 = vsyncadd (%p44_p1), [#allocation6], 4294966784  ;;  %v1389_v0 = vmov 0   ;;  %vm298_vm0 = vcmask 64512   ;;  %v290_v1 = vld [vmem:[%s252_s25] sm:$0xff]  ;;  %v291_v2 = vld [vmem:[%s252_s25 + $0x8] sm:$0xff]  ;;  %v348_v16 = vlaneseq }
  0x2f   : > { %1252 = vset.pattern.permute.xlu0 %v1389_v0  ;;  %1253 = vset.pattern.permute.xlu1 %v1389_v0  ;;  %v289_v3 = vld [vmem:[%s1707_s1] sm:$0xff]  ;;  %v1554_v5 = vld [vmem:[%s1709_s3 + $0x8] sm:$0xff]  ;;  %s1390_s12 = smov 120   ;;  %s1391_s13 = smov 16  }
  0x30   : > { %317 = vmatpush.msra.mxu0 %v290_v1  ;;  %337 = vmatpush.msra.mxu1 %v291_v2  ;;  %v292_v4 = vld [vmem:[%s1708_s2] sm:$0xff]  ;;  %s1392_s19 = smov 15   ;;  %s1393_s7 = smov 104   ;;  %v1608_v18 = vand.u32 127, %v348_v16 }
  0x31   : > { %1130 = vmatmul.msk.f32.vlgmr.msra.gmra.mxu0 %vm298_vm0, %v289_v3  ;;  %1131 = vmatmul.msk.f32.vlgmr.msra.gmra.mxu1 %vm298_vm0, %v289_v3  ;;  %v1571_v13 = vld [vmem:[%s1709_s3] sm:$0xff]  ;;  %s1394_s20 = smov 112   ;;  %s1395_s25 = smov 17  }
  0x32   : > { %295 = vperm.xlu0 %1252, %v292_v4   ;;  %383 = vrot.lane.b32.xlu2 %v1554_v5, %s1390_s12  ;;  %s1396_s29 = smov 1   ;;  %s1397_s30 = smov 96   ;;  %v996_v14 = vld [vmem:[%s1710_s4] sm:$0xff]  ;;  %vm367_vm1 = vcmp.lt.s32.totalorder %v1608_v18, 16  ;;  %vm489_vm2 = vcmp.lt.s32.totalorder %v1608_v18, 15  ;;  %vm350_vm3 = vcmp.lt.s32.totalorder %v1608_v18, 17 }
  0x33   : > { %s1398_s15 = smov 80   ;;  %s1399_s8 = smov 113   ;;  %v371_v19 = vld [vmem:[#allocation5 + $0x1] ss:$8 sm:$0x3]  ;;  %vm563_vm4 = vcmp.lt.s32.totalorder %v1608_v18, 1 }
  0x34   : > { %s1400_s9 = smov 88   ;;  %s1401_s10 = smov 127   ;;  %v373_v20 = vperm.slane %v371_v19, 0  ;;  %v374_v21 = vperm.slane %v371_v19, 1  ;;  %vm778_vm5 = vcmp.lt.s32.totalorder %v1608_v18, 113  ;;  %vm704_vm6 = vcmp.lt.s32.totalorder %v1608_v18, 127 }
  0x35   : > { %s1404_s26 = smov 72   ;;  %v493_v32 = vld [vmem:[#allocation5 + $0x2] ss:$8 sm:$0x3]  ;;  %vm926_vm7 = vcmp.lt.s32.totalorder %v1608_v18, 111  ;;  %vm852_vm8 = vcmp.lt.s32.totalorder %v1608_v18, 112 }
  0x36   : > { %v634_v33 = vld [vmem:[#allocation5 + $0x4] ss:$8 sm:$0x3]  ;;  %v495_v34 = vperm.slane %v493_v32, 0  ;;  %v496_v35 = vperm.slane %v493_v32, 1 }
  0x37   : > { %v636_v37 = vperm.slane %v634_v33, 0  ;;  %v637_v38 = vperm.slane %v634_v33, 1  ;;  %v353_v44 = vld [vmem:[#allocation5] ss:$8 sm:$0x3] }
  0x38   : > { %v355_v48 = vperm.slane %v353_v44, 0  ;;  %v356_v49 = vperm.slane %v353_v44, 1  ;;  %v567_v56 = vld [vmem:[#allocation5 + $0x3] ss:$8 sm:$0x3] }
  0x39   : > { %v569_v57 = vperm.slane %v567_v56, 0  ;;  %v570_v58 = vperm.slane %v567_v56, 1  ;;  %v997_v19 = vld [vmem:[%s1710_s4 + $0x8] sm:$0xff] }
  0x8c   : > { %v384_v15 = vpop.permute.xlu2 %383 }
  0xa4   : > { %v296_v6 = vpop.permute.xlu0 %295 }
  0xae   : > { %v319_v7 = vpop.f32.mrf.mxu0  ;;  %v339_v8 = vpop.f32.mrf.mxu1 }
  0xaf   : > { %v320_v9 = vadd.f32 %v319_v7, %v296_v6  ;;  %v340_v10 = vadd.f32 %v339_v8, %v296_v6  ;;  %v782_v6 = vld [vmem:[#allocation5 + $0x6] ss:$8 sm:$0x3] }
  0xb0   : > { %v784_v7 = vperm.slane %v782_v6, 0  ;;  %v785_v8 = vperm.slane %v782_v6, 1 }
  0xb1   : > { %v1559_v11 = vmax.f32 %v320_v9, 0.0  ;;  %v1561_v12 = vmax.f32 %v340_v10, 0.0 }
  0xb3   : > { %365 = vrot.lane.b32.xlu1 %v1561_v12, %s1391_s13  ;;  %485 = vrot.lane.b32.xlu2 %v1559_v11, %s1392_s19  ;;  %v640_v45 = vmul.f32 %v636_v37, %v1559_v11  ;;  %v641_v46 = vmul.f32 %v637_v38, %v1561_v12 }
  0xb4   : > { %363 = vrot.lane.b32.xlu0 %v1559_v11, %s1391_s13 }
  0xbb   : > { %381 = vrot.lane.b32.xlu1 %v1571_v13, %s1390_s12  ;;  %575 = vrot.lane.b32.xlu2 %v1571_v13, %s1393_s7  ;;  %s1402_s12 = smov 111  }
  0xbc   : > { %501 = vrot.lane.b32.xlu0 %v1571_v13, %s1394_s20 }
  0xc3   : > { %503 = vrot.lane.b32.xlu1 %v1554_v5, %s1394_s20  ;;  %346 = vrot.lane.b32.xlu2 %v1561_v12, %s1395_s25 }
  0xc4   : > { %487 = vrot.lane.b32.xlu0 %v1561_v12, %s1392_s19  ;;  %s1403_s19 = smov 64  }
  0xcb   : > { %344 = vrot.lane.b32.xlu1 %v1559_v11, %s1395_s25  ;;  %559 = vrot.lane.b32.xlu2 %v1559_v11, %s1396_s29  ;;  %s1334_s25 = scalar_lea.hbm %s1712_s6, 64 }
  0xcc   : > { %644 = vrot.lane.b32.xlu0 %v1554_v5, %s1397_s30 }
  0xd3   : > { %642 = vrot.lane.b32.xlu1 %v1571_v13, %s1397_s30  ;;  %792 = vrot.lane.b32.xlu2 %v1554_v5, %s1398_s15  ;;  %s1174_s30 = sshll.u32 %s1466_s28, 4 }
  0xd4   : > { %561 = vrot.lane.b32.xlu0 %v1561_v12, %s1396_s29  ;;  %s1129_s29 = sshll.u32 %s1533_s17, 5 }
  0xdb   : > { %577 = vrot.lane.b32.xlu1 %v1554_v5, %s1393_s7  ;;  %774 = vrot.lane.b32.xlu2 %v1559_v11, %s1399_s8 }
  0xdc   : > { %790 = vrot.lane.b32.xlu0 %v1571_v13, %s1398_s15  ;;  %s286_s15 = scalar_lea.vmem [#allocation7], %s1129_s29 }
  0xdd   : > { %s1033_s28 = sshll.u32 %s286_s15, 4  ;;  %s1034_s28 = int_to_ptr.vmem [resolvable:$true] %s1033_s28 }
  0xe3   : > { %716 = vrot.lane.b32.xlu1 %v1571_v13, %s1400_s9  ;;  %702 = vrot.lane.b32.xlu2 %v1561_v12, %s1401_s10 }
  0xe4   : > { %776 = vrot.lane.b32.xlu0 %v1561_v12, %s1399_s8 }
  0xeb   : > { %700 = vrot.lane.b32.xlu1 %v1559_v11, %s1401_s10  ;;  %924 = vrot.lane.b32.xlu2 %v1561_v12, %s1402_s12  ;;  %s1032_s10 = scalar_lea.hbm %s1712_s6, %s1174_s30 }
  0xec   : > { %718 = vrot.lane.b32.xlu0 %v1554_v5, %s1400_s9 }
  0xf3   : > { %922 = vrot.lane.b32.xlu1 %v1559_v11, %s1402_s12  ;;  %938 = vrot.lane.b32.xlu2 %v1571_v13, %s1403_s19  ;;  %s1035_s12 = sshll.u32 %s1032_s10, 4  ;;  %s1036_s12 = int_to_ptr.hbm [resolvable:$true] %s1035_s12 }
  0xf4   : > { %848 = vrot.lane.b32.xlu0 %v1559_v11, %s1394_s20 }
  0xfb   : > { %850 = vrot.lane.b32.xlu1 %v1561_v12, %s1394_s20  ;;  %866 = vrot.lane.b32.xlu2 %v1554_v5, %s1404_s26 }
  0xfc   : > { %864 = vrot.lane.b32.xlu0 %v1571_v13, %s1404_s26  ;;  %s1328_s26 = sshra.s32 %s1036_s12, 4  ;;  %s1329_s26 = int_to_ptr.hbm [resolvable:$true] %s1328_s26 }
  0xfd   : > { %s1330_s27 = scalar_lea.hbm %s1329_s26, 32  ;;  %p1335_p12 = scmp.lt.s32.totalorder %s1329_s26, %s1712_s6 }
  0xfe   : > { %p1331_p1 = scmp.ne.s32.totalorder %s1329_s26, %s1330_s27  ;;  %p1336_p8 = scmp.lt.s32.totalorder %s1334_s25, %s1330_s27 }
 0x100   : > { %p1332_p3 = pnand %p1331_p1, %p1502_p13  ;;  %p1337_p7 = por %p1336_p8, %p1335_p12 }
 0x102   : > { %p1333_p5 = pneg %p1332_p3 }
 0x103   : > { %940 = vrot.lane.b32.xlu1 %v1554_v5, %s1403_s19  ;;  %s1021_s19 = scalar_lea.sflag [#allocation4], %s1533_s17 }
 0x104   : > { %1000 = vperm.xlu0 %1252, %v996_v14   ;;  %v708_v14 = vld [vmem:[#allocation5 + $0x5] ss:$8 sm:$0x3]  ;;  %p1338_p9 = pnand %p1337_p7, %p1333_p5 }
 0x105   : > { %v710_v16 = vperm.slane %v708_v14, 0 }
 0x10b   : > { %1005 = vperm.xlu1 %1253, %v997_v19  }
 0x10d   : > { %v486_v17 = vpop.permute.xlu2 %485 }
 0x115   : > { %v1611_v24 = vpop.permute.xlu2 %575 }
 0x11d   : > { %v347_v31 = vpop.permute.xlu2 %346 }
 0x125   : > { %v366_v22 = vpop.permute.xlu1 %365  ;;  %v560_v47 = vpop.permute.xlu2 %559 }
 0x126   : > { %v364_v23 = vpop.permute.xlu0 %363 }
 0x127   : > { %v369_v25 = vsel %vm367_vm1, %v366_v22, %v364_v23  ;;  %v368_v26 = vsel %vm367_vm1, %v364_v23, %v366_v22 }
 0x128   : > { %v377_v27 = vmul.f32 %v373_v20, %v369_v25  ;;  %v378_v28 = vmul.f32 %v374_v21, %v368_v26  ;;  %v930_v26 = vld [vmem:[#allocation5 + $0x10] ss:$8 sm:$0x3] }
 0x12a   : > { %404 = vmatpush.msra.mxu2 %v377_v27  ;;  %427 = vmatpush.msra.mxu3 %v378_v28  ;;  %v932_v28 = vperm.slane %v930_v26, 0 }
 0x12d   : > { %v382_v29 = vpop.permute.xlu1 %381  ;;  %v1628_v59 = vpop.permute.xlu2 %792 }
 0x12e   : > { %v502_v30 = vpop.permute.xlu0 %501  ;;  %1132 = vmatmul.msk.f32.vlgmr.msra.gmra.mxu2 %vm298_vm0, %v382_v29  ;;  %1134 = vmatmul.msk.f32.vlgmr.msra.gmra.mxu3 %vm298_vm0, %v382_v29  ;;  %v933_v29 = vperm.slane %v930_v26, 1 }
 0x135   : > { %v504_v36 = vpop.permute.xlu1 %503  ;;  %v775_v4 = vpop.permute.xlu2 %774 }
 0x136   : > { %v488_v39 = vpop.permute.xlu0 %487  ;;  %1133 = vmatmul.msk.f32.gmra.mxu2 %vm298_vm0, %v384_v15  ;;  %1135 = vmatmul.msk.f32.gmra.mxu3 %vm298_vm0, %v384_v15 }
 0x137   : > { %v490_v40 = vsel %vm489_vm2, %v486_v17, %v488_v39  ;;  %v491_v41 = vsel %vm489_vm2, %v488_v39, %v486_v17  ;;  %v711_v17 = vperm.slane %v708_v14, 1 }
 0x138   : > { %v499_v42 = vmul.f32 %v495_v34, %v491_v41  ;;  %v500_v43 = vmul.f32 %v496_v35, %v490_v40 }
 0x13a   : > { %524 = vmatpush.msrb.mxu2 %v499_v42  ;;  %547 = vmatpush.msrb.mxu3 %v500_v43 }
 0x13c   : > { %665 = vmatpush.msra.mxu2 %v640_v45  ;;  %688 = vmatpush.msra.mxu3 %v641_v46 }
 0x13d   : > { %v345_v50 = vpop.permute.xlu1 %344  ;;  %v703_v15 = vpop.permute.xlu2 %702 }
 0x13e   : > { %v351_v51 = vsel %vm350_vm3, %v345_v50, %v347_v31  ;;  %v352_v52 = vsel %vm350_vm3, %v347_v31, %v345_v50  ;;  %v645_v53 = vpop.permute.xlu0 %644  ;;  %1140 = vmatmul.msk.f32.vlgmr.msrb.gmra.mxu2 %vm298_vm0, %v502_v30  ;;  %1142 = vmatmul.msk.f32.vlgmr.msrb.gmra.mxu3 %vm298_vm0, %v502_v30 }
 0x13f   : > { %v359_v54 = vmul.f32 %v355_v48, %v352_v52  ;;  %v360_v55 = vmul.f32 %v356_v49, %v351_v51 }
 0x141   : > { %454 = vmatpush.msrb.mxu0 %v359_v54  ;;  %477 = vmatpush.msrb.mxu1 %v360_v55 }
 0x142   : > { %1136 = vmatmul.msk.f32.vlgmr.msrb.gmra.mxu0 %vm298_vm0, %v1571_v13  ;;  %1138 = vmatmul.msk.f32.vlgmr.msrb.gmra.mxu1 %vm298_vm0, %v1571_v13 }
 0x145   : > { %v643_v60 = vpop.permute.xlu1 %642  ;;  %v925_v27 = vpop.permute.xlu2 %924 }
 0x146   : > { %v562_v61 = vpop.permute.xlu0 %561  ;;  %1141 = vmatmul.msk.f32.gmra.mxu2 %vm298_vm0, %v504_v36  ;;  %1143 = vmatmul.msk.f32.gmra.mxu3 %vm298_vm0, %v504_v36  ;;  %v856_v36 = vld [vmem:[#allocation5 + $0x7] ss:$8 sm:$0x3] }
 0x147   : > { %v564_v62 = vsel %vm563_vm4, %v560_v47, %v562_v61  ;;  %v565_v63 = vsel %vm563_vm4, %v562_v61, %v560_v47  ;;  %v858_v37 = vperm.slane %v856_v36, 0  ;;  %v859_v38 = vperm.slane %v856_v36, 1 }
 0x148   : > { %v573_v0 = vmul.f32 %v569_v57, %v565_v63  ;;  %v574_v1 = vmul.f32 %v570_v58, %v564_v62 }
 0x14a   : > { %598 = vmatpush.msra.mxu0 %v573_v0  ;;  %621 = vmatpush.msra.mxu1 %v574_v1 }
 0x14b   : > { %1137 = vmatmul.msk.f32.gmra.mxu0 %vm298_vm0, %v1554_v5  ;;  %1139 = vmatmul.msk.f32.gmra.mxu1 %vm298_vm0, %v1554_v5 }
 0x14d   : > { %v578_v2 = vpop.permute.xlu1 %577  ;;  %v939_v39 = vpop.permute.xlu2 %938 }
 0x14e   : > { %v791_v3 = vpop.permute.xlu0 %790  ;;  %1148 = vmatmul.msk.f32.vlgmr.msra.gmra.mxu2 %vm298_vm0, %v643_v60  ;;  %1150 = vmatmul.msk.f32.vlgmr.msra.gmra.mxu3 %vm298_vm0, %v643_v60 }
 0x153   : > { %1144 = vmatmul.msk.f32.vlgmr.msra.gmra.mxu0 %vm298_vm0, %v1611_v24  ;;  %1146 = vmatmul.msk.f32.vlgmr.msra.gmra.mxu1 %vm298_vm0, %v1611_v24 }
 0x155   : > { %v717_v9 = vpop.permute.xlu1 %716  ;;  %v867_v46 = vpop.permute.xlu2 %866 }
 0x156   : > { %v777_v5 = vpop.permute.xlu0 %776  ;;  %1149 = vmatmul.msk.f32.gmra.mxu2 %vm298_vm0, %v645_v53  ;;  %1151 = vmatmul.msk.f32.gmra.mxu3 %vm298_vm0, %v645_v53 }
 0x157   : > { %v779_v10 = vsel %vm778_vm5, %v775_v4, %v777_v5  ;;  %v780_v11 = vsel %vm778_vm5, %v777_v5, %v775_v4 }
 0x158   : > { %v788_v12 = vmul.f32 %v784_v7, %v779_v10  ;;  %v789_v13 = vmul.f32 %v785_v8, %v780_v11 }
 0x15a   : > { %813 = vmatpush.msrb.mxu2 %v788_v12  ;;  %836 = vmatpush.msrb.mxu3 %v789_v13 }
 0x15b   : > { %1145 = vmatmul.msk.f32.gmra.mxu0 %vm298_vm0, %v578_v2  ;;  %1147 = vmatmul.msk.f32.gmra.mxu1 %vm298_vm0, %v578_v2 }
 0x15d   : > { %v701_v20 = vpop.permute.xlu1 %700 }
 0x15e   : > { %v705_v21 = vsel %vm704_vm6, %v701_v20, %v703_v15  ;;  %v706_v22 = vsel %vm704_vm6, %v703_v15, %v701_v20  ;;  %v719_v23 = vpop.permute.xlu0 %718  ;;  %1156 = vmatmul.msk.f32.vlgmr.msrb.gmra.mxu2 %vm298_vm0, %v791_v3  ;;  %1158 = vmatmul.msk.f32.vlgmr.msrb.gmra.mxu3 %vm298_vm0, %v791_v3 }
 0x15f   : > { %v714_v24 = vmul.f32 %v710_v16, %v705_v21  ;;  %v715_v25 = vmul.f32 %v711_v17, %v706_v22 }
 0x161   : > { %739 = vmatpush.msrb.mxu0 %v714_v24  ;;  %762 = vmatpush.msrb.mxu1 %v715_v25 }
 0x163   : > { %1152 = vmatmul.msk.f32.vlgmr.msrb.gmra.mxu0 %vm298_vm0, %v717_v9  ;;  %1154 = vmatmul.msk.f32.vlgmr.msrb.gmra.mxu1 %vm298_vm0, %v717_v9 }
 0x165   : > { %v923_v30 = vpop.permute.xlu1 %922 }
 0x166   : > { %v927_v31 = vsel %vm926_vm7, %v923_v30, %v925_v27  ;;  %v928_v32 = vsel %vm926_vm7, %v925_v27, %v923_v30  ;;  %1157 = vmatmul.msk.f32.gmra.mxu2 %vm298_vm0, %v1628_v59  ;;  %1159 = vmatmul.msk.f32.gmra.mxu3 %vm298_vm0, %v1628_v59  ;;  %v849_v35 = vpop.permute.xlu0 %848 }
 0x167   : > { %v936_v33 = vmul.f32 %v932_v28, %v927_v31  ;;  %v937_v34 = vmul.f32 %v933_v29, %v928_v32 }
 0x169   : > { %961 = vmatpush.msra.mxu2 %v936_v33  ;;  %984 = vmatpush.msra.mxu3 %v937_v34 }
 0x16b   : > { %1153 = vmatmul.msk.f32.gmra.mxu0 %vm298_vm0, %v719_v23  ;;  %1155 = vmatmul.msk.f32.gmra.mxu1 %vm298_vm0, %v719_v23 }
 0x16d   : > { %v851_v40 = vpop.permute.xlu1 %850 }
 0x16e   : > { %v853_v41 = vsel %vm852_vm8, %v849_v35, %v851_v40  ;;  %v854_v42 = vsel %vm852_vm8, %v851_v40, %v849_v35  ;;  %1164 = vmatmul.msk.f32.vlgmr.msra.gmra.mxu2 %vm298_vm0, %v939_v39  ;;  %1166 = vmatmul.msk.f32.vlgmr.msra.gmra.mxu3 %vm298_vm0, %v939_v39  ;;  %v865_v45 = vpop.permute.xlu0 %864 }
 0x16f   : > { %v862_v43 = vmul.f32 %v858_v37, %v853_v41  ;;  %v863_v44 = vmul.f32 %v859_v38, %v854_v42 }
 0x171   : > { %887 = vmatpush.msra.mxu0 %v862_v43  ;;  %910 = vmatpush.msra.mxu1 %v863_v44 }
 0x173   : > { %1160 = vmatmul.msk.f32.vlgmr.msra.gmra.mxu0 %vm298_vm0, %v865_v45  ;;  %1162 = vmatmul.msk.f32.vlgmr.msra.gmra.mxu1 %vm298_vm0, %v865_v45 }
 0x175   : > { %v941_v18 = vpop.permute.xlu1 %940 }
 0x176   : > { %1165 = vmatmul.msk.f32.gmra.mxu2 %vm298_vm0, %v941_v18  ;;  %1167 = vmatmul.msk.f32.gmra.mxu3 %vm298_vm0, %v941_v18  ;;  %v1001_v42 = vpop.permute.xlu0 %1000 }
 0x17b   : > { %1161 = vmatmul.msk.f32.gmra.mxu0 %vm298_vm0, %v867_v46  ;;  %1163 = vmatmul.msk.f32.gmra.mxu1 %vm298_vm0, %v867_v46 }
 0x1b1   : > { %v406_v47 = vpop.f32.mrf.mxu2  ;;  %v429_v48 = vpop.f32.mrf.mxu3 }
 0x1b9   : > { %v409_v49 = vpop.f32.mrf.mxu2  ;;  %v432_v50 = vpop.f32.mrf.mxu3 }
 0x1bf   : > { %v456_v51 = vpop.f32.mrf.mxu0  ;;  %v479_v52 = vpop.f32.mrf.mxu1 }
 0x1c0   : > { %v457_v3 = vadd.f32 %v456_v51, %v406_v47  ;;  %v480_v4 = vadd.f32 %v479_v52, %v429_v48 }
 0x1c1   : > { %v526_v53 = vpop.f32.mrf.mxu2  ;;  %v549_v54 = vpop.f32.mrf.mxu3 }
 0x1c2   : > { %v555_v5 = vadd.f32 %v526_v53, %v457_v3  ;;  %v556_v10 = vadd.f32 %v549_v54, %v480_v4  ;;  %v1006_v54 = vpop.permute.xlu1 %1005 }
 0x1c8   : > { %v459_v55 = vpop.f32.mrf.mxu0  ;;  %v482_v56 = vpop.f32.mrf.mxu1 }
 0x1c9   : > { %v529_v57 = vpop.f32.mrf.mxu2  ;;  %v552_v58 = vpop.f32.mrf.mxu3  ;;  %v460_v13 = vadd.f32 %v459_v55, %v409_v49  ;;  %v483_v14 = vadd.f32 %v482_v56, %v432_v50 }
 0x1cb   : > { %v557_v22 = vadd.f32 %v529_v57, %v460_v13  ;;  %v558_v23 = vadd.f32 %v552_v58, %v483_v14 }
 0x1d0   : > { %v600_v59 = vpop.f32.mrf.mxu0  ;;  %v623_v60 = vpop.f32.mrf.mxu1 }
 0x1d1   : > { %v667_v61 = vpop.f32.mrf.mxu2  ;;  %v690_v62 = vpop.f32.mrf.mxu3  ;;  %v629_v11 = vadd.f32 %v600_v59, %v555_v5  ;;  %v630_v12 = vadd.f32 %v623_v60, %v556_v10 }
 0x1d3   : > { %v696_v17 = vadd.f32 %v667_v61, %v629_v11  ;;  %v697_v19 = vadd.f32 %v690_v62, %v630_v12 }
 0x1d8   : > { %v603_v63 = vpop.f32.mrf.mxu0  ;;  %v626_v0 = vpop.f32.mrf.mxu1 }
 0x1d9   : > { %v670_v1 = vpop.f32.mrf.mxu2  ;;  %v693_v2 = vpop.f32.mrf.mxu3  ;;  %v631_v26 = vadd.f32 %v603_v63, %v557_v22  ;;  %v632_v27 = vadd.f32 %v626_v0, %v558_v23 }
 0x1db   : > { %v698_v32 = vadd.f32 %v670_v1, %v631_v26  ;;  %v699_v33 = vadd.f32 %v693_v2, %v632_v27 }
 0x1e0   : > { %v741_v6 = vpop.f32.mrf.mxu0  ;;  %v764_v7 = vpop.f32.mrf.mxu1 }
 0x1e1   : > { %v815_v8 = vpop.f32.mrf.mxu2  ;;  %v838_v9 = vpop.f32.mrf.mxu3  ;;  %v770_v24 = vadd.f32 %v741_v6, %v696_v17  ;;  %v771_v25 = vadd.f32 %v764_v7, %v697_v19 }
 0x1e3   : > { %v844_v28 = vadd.f32 %v815_v8, %v770_v24  ;;  %v845_v29 = vadd.f32 %v838_v9, %v771_v25 }
 0x1e8   : > { %v744_v15 = vpop.f32.mrf.mxu0  ;;  %v767_v16 = vpop.f32.mrf.mxu1 }
 0x1e9   : > { %v818_v20 = vpop.f32.mrf.mxu2  ;;  %v841_v21 = vpop.f32.mrf.mxu3  ;;  %v772_v38 = vadd.f32 %v744_v15, %v698_v32  ;;  %v773_v39 = vadd.f32 %v767_v16, %v699_v33 }
 0x1eb   : > { %v846_v45 = vadd.f32 %v818_v20, %v772_v38  ;;  %v847_v18 = vadd.f32 %v841_v21, %v773_v39 }
 0x1f0   : > { %v889_v30 = vpop.f32.mrf.mxu0  ;;  %v912_v31 = vpop.f32.mrf.mxu1 }
 0x1f1   : > { %v918_v34 = vadd.f32 %v889_v30, %v844_v28  ;;  %v919_v35 = vadd.f32 %v912_v31, %v845_v29  ;;  %v963_v36 = vpop.f32.mrf.mxu2  ;;  %v986_v37 = vpop.f32.mrf.mxu3 }
 0x1f3   : > { %v992_v40 = vadd.f32 %v963_v36, %v918_v34  ;;  %v993_v41 = vadd.f32 %v986_v37, %v919_v35 }
 0x1f5   : > { %v1008_v43 = vadd.f32 %v1001_v42, %v992_v40  ;;  %v1009_v44 = vadd.f32 %v1001_v42, %v993_v41 }
 0x1f7   : > { %v1012_v46 = vmax.f32 %v1008_v43, 0.0  ;;  %v1013_v47 = vmax.f32 %v1009_v44, 0.0 }
 0x1f8   : > { %v892_v48 = vpop.f32.mrf.mxu0  ;;  %v915_v49 = vpop.f32.mrf.mxu1 }
 0x1f9   : > { %1016 = vst [vmem:[%s286_s15] sm:$0xff] %v1012_v46  ;;  %v920_v50 = vadd.f32 %v892_v48, %v846_v45  ;;  %v921_v51 = vadd.f32 %v915_v49, %v847_v18  ;;  %v966_v52 = vpop.f32.mrf.mxu2  ;;  %v989_v53 = vpop.f32.mrf.mxu3 }
 0x1fa   : > { %1017 = vst [vmem:[%s286_s15 + $0x8] sm:$0xff] %v1013_v47 }
 0x1fb   : > { %v994_v55 = vadd.f32 %v966_v52, %v920_v50  ;;  %v995_v56 = vadd.f32 %v989_v53, %v921_v51 }
 0x1fd   : > { %v1010_v57 = vadd.f32 %v1006_v54, %v994_v55  ;;  %v1011_v58 = vadd.f32 %v1006_v54, %v995_v56 }
 0x1ff   : > { %v1014_v59 = vmax.f32 %v1010_v57, 0.0  ;;  %v1015_v60 = vmax.f32 %v1011_v58, 0.0 }
 0x201   : > { %1018 = vst [vmem:[%s286_s15 + $0x10] sm:$0xff] %v1014_v59 }
 0x202   : > { %1019 = vst [vmem:[%s286_s15 + $0x18] sm:$0xff] %v1015_v60 }
 0x203   : > { %1341 = shalt.err (!%p1338_p9)
}
 0x204   : > { %s1405_s17 = smov 256   ;;  %s1406_s15 = smov 512  }
 0x205   : > { %1181 = dma.vmem_to_hbm [thread:$0]  (%p1502_p13), %s1034_s28, 512, %s1036_s12, %s1021_s19, %s1405_s17, %s1406_s15, %s1391_s13  }
 0x206 PF: > { %s1050_s8 = sand.u32 1, %s1372_s21   ;;  %p1718_p10 = scmp.ge.s32.totalorder %s1384_s24, 2 }
 0x207   : > { %s1051_s9 = scalar_lea.sflag [#allocation4], %s1050_s8 }
 0x208   : > { %p1192_p11 = pnand %p1718_p10, %p1507_p4 }
 0x20a   : > { %p1193_p0 = pneg %p1192_p11 }
 0x20c   : > { %1367 = dma.done.wait (%p1193_p0), %s1051_s9, 512  }
 0x20d   : > { %1369 = vsyncadd (%p1193_p0), %s1051_s9, 4294966784  ;;  %p20_p2 = scmp.ge.s32.totalorder %s1482_s11, 4   ;;  %s1719_s21 = smov %s1376_s22 }
 0x20e   : > { %s1720_s22 = smov %s1380_s23  ;;  %s1721_s23 = smov %s1494_s14 }
 0x20f   : > { %s1722_s24 = smov %s1482_s11  ;;  %22 = sbr.rel (!%p20_p2) target bundleno = 6 (0x6), region = 101 }
 0x214   :  { %1057 = vsyncpa [#allocation3], 1 }
 0x215   :  { %1059 = vsyncpa [#allocation3 + $0x1], 1 }
 0x216   :  { %1060 = vsyncpa [#allocation6], 1 }
 0x217   :  { %1061 = vsyncpa [#allocation4], 1 }
 0x218   :  { %1063 = vsyncpa [#allocation4 + $0x1], 1 }

</bundles_post_ra>
